<compile_context>
chip_gen: v6e
topology: v6e:2x2x1
jax: 0.10.0
libtpu: 0.0.40
codegen_flags: <defaults>
</compile_context>

<pallas_src>
import functools

import jax
import jax.numpy as jnp
import numpy as np
from jax.experimental import pallas as pl
from jax.experimental.pallas import tpu as pltpu


# ----------------------------- Pallas kernel -------------------------------

def _lstm_encoder_kernel(x_ref, wih_ref, whh_ref, b_ref, out_ref, *, alpha):
    # x_ref:   (T, Bp, 2)  time-major input sequences (zero-padded batch rows OK)
    # wih_ref: (2, 4H)     W_ih^T
    # whh_ref: (H, 4H)     W_hh^T
    # b_ref:   (1, 4H)     b_ih + b_hh
    # out_ref: (Bp, H)     leaky_relu(final hidden state)
    T, Bp, _ = x_ref.shape
    H = whh_ref.shape[0]

    wih = wih_ref[...]            # (2, 4H)
    whh = whh_ref[...]            # (H, 4H)
    b = b_ref[...]                # (1, 4H)

    # Hoisted input projection: ONE MXU call + one bias broadcast for all T
    # timesteps, keeping the awkward K=2 matmul off the serial recurrence.
    x2 = x_ref[...].reshape(T * Bp, 2)
    xproj = jnp.dot(x2, wih, preferred_element_type=jnp.float32) + b   # (T*Bp, 4H)
    xproj = xproj.reshape(T, Bp, 4 * H)   # time-major: xproj[t] is whole tiles

    # Recurrence: fully unrolled (T static); h/c live in vregs, no VMEM scratch.
    h = jnp.zeros((Bp, H), jnp.float32)
    c = jnp.zeros((Bp, H), jnp.float32)
    for t in range(T):
        gates = xproj[t] + jnp.dot(
            h, whh, preferred_element_type=jnp.float32)                # (Bp, 4H)
        sg = jax.nn.sigmoid(gates)   # full-width EUP: holds i | f | . | o
        tg = jnp.tanh(gates)         # full-width EUP: holds g
        i = sg[:, 0 * H:1 * H]
        f = sg[:, 1 * H:2 * H]
        g = tg[:, 2 * H:3 * H]
        o = sg[:, 3 * H:4 * H]
        c = f * c + i * g
        h = o * jnp.tanh(c)

    out_ref[...] = jnp.where(h > 0, h, alpha * h).astype(out_ref.dtype)


def lstm_encode(x_tb2, wih_t, whh_t, bias, alpha):
    """Run the fused LSTM encoder kernel. x_tb2: (T, Bp, 2) f32 -> (Bp, H) f32."""
    T, Bp, _ = x_tb2.shape
    H = whh_t.shape[0]
    kernel = functools.partial(_lstm_encoder_kernel, alpha=float(alpha))
    return pl.pallas_call(
        kernel,
        out_shape=jax.ShapeDtypeStruct((Bp, H), jnp.float32),
        in_specs=[pl.BlockSpec(memory_space=pltpu.MemorySpace.VMEM)] * 4,
        out_specs=pl.BlockSpec(memory_space=pltpu.MemorySpace.VMEM),
    )(x_tb2, wih_t, whh_t, bias)


# ----------------------------- Module wrapper -------------------------------

def init_csp_encoder_params(key, hidden_size):
    """Deterministic nn.LSTM(2, H, 1)-style init: U(-1/sqrt(H), 1/sqrt(H))."""
    H = hidden_size
    k = 1.0 / np.sqrt(H)
    k1, k2, k3, k4 = jax.random.split(key, 4)
    w_ih = jax.random.uniform(k1, (4 * H, 2), jnp.float32, -k, k)
    w_hh = jax.random.uniform(k2, (4 * H, H), jnp.float32, -k, k)
    b_ih = jax.random.uniform(k3, (4 * H,), jnp.float32, -k, k)
    b_hh = jax.random.uniform(k4, (4 * H,), jnp.float32, -k, k)
    return dict(w_ih=w_ih, w_hh=w_hh, b_ih=b_ih, b_hh=b_hh)


def csp_encoder_forward(params, nbrs_hist, ego_hist, alpha, hidden_size):
    """Mirrors CSPEncoder.forward. nbrs_hist: (B, N, T, 2); ego_hist: (Be, T, 2)."""
    H = hidden_size
    wih_t = params["w_ih"].T                              # (2, 4H)
    whh_t = params["w_hh"].T                              # (H, 4H)
    bias = (params["b_ih"] + params["b_hh"]).reshape(1, 4 * H)

    B, N, T, _ = nbrs_hist.shape
    Be = ego_hist.shape[0]

    # Single fused launch: concatenate neighbor + ego sequences along batch,
    # pad batch to a multiple of 8, and hand the kernel a time-major slab.
    nbrs_flat = nbrs_hist.reshape(B * N, T, 2).astype(jnp.float32)
    ego_f = ego_hist.astype(jnp.float32)
    n_total = B * N + Be
    Bp = ((n_total + 7) // 8) * 8
    x_all = jnp.concatenate([nbrs_flat, ego_f], axis=0)   # (n_total, T, 2)
    if Bp != n_total:
        x_all = jnp.pad(x_all, ((0, Bp - n_total), (0, 0), (0, 0)))
    x_all = jnp.transpose(x_all, (1, 0, 2))               # (T, Bp, 2) time-major

    h_all = lstm_encode(x_all, wih_t, whh_t, bias, alpha)  # (Bp, H), leaky_relu fused

    neighbors_encoded = h_all[:B * N].reshape(B, N, H)
    if B == 1:  # torch .squeeze(0) only drops dim 0 when it equals 1
        neighbors_encoded = jnp.squeeze(neighbors_encoded, axis=0)
    ego_encoded = h_all[B * N:B * N + Be]                   # (Be, H)
    return neighbors_encoded, ego_encoded


# --------------------------- pure-JAX reference ------------------------------

def _lstm_ref(x_tb2, params, H):
    T, B, _ = x_tb2.shape
    h = jnp.zeros((B, H), jnp.float32)
    c = jnp.zeros((B, H), jnp.float32)
    for t in range(T):
        gates = (x_tb2[t] @ params["w_ih"].T + params["b_ih"]
                 + h @ params["w_hh"].T + params["b_hh"])
        i = jax.nn.sigmoid(gates[:, :H])
        f = jax.nn.sigmoid(gates[:, H:2 * H])
        g = jnp.tanh(gates[:, 2 * H:3 * H])
        o = jax.nn.sigmoid(gates[:, 3 * H:4 * H])
        c = f * c + i * g
        h = o * jnp.tanh(c)
    return h


def _ref_forward(params, nbrs_hist, ego_hist, alpha, H):
    B, N, T, _ = nbrs_hist.shape
    nbrs_tb = jnp.transpose(nbrs_hist.reshape(B * N, T, 2), (1, 0, 2)).astype(jnp.float32)
    nb = _lstm_ref(nbrs_tb, params, H).reshape(B, N, H)
    if B == 1:
        nb = jnp.squeeze(nb, axis=0)
    nb = jnp.where(nb > 0, nb, alpha * nb)
    ego_tb = jnp.transpose(ego_hist, (1, 0, 2)).astype(jnp.float32)
    eg = _lstm_ref(ego_tb, params, H)
    eg = jnp.where(eg > 0, eg, alpha * eg)
    return nb, eg


# --------------------------------- main --------------------------------------

if __name__ == "__main__":
    cfg = {"model_params": {"history_num_frames": 8,
                            "alpha": 0.1,
                            "LSTM_hidden_size": 32}}
    H = cfg["model_params"]["LSTM_hidden_size"]
    alpha = cfg["model_params"]["alpha"]
    T = cfg["model_params"]["history_num_frames"]
    B, N = 2, 4

    key = jax.random.PRNGKey(0)
    kp, kn, ke = jax.random.split(key, 3)
    params = init_csp_encoder_params(kp, H)
    nbrs_hist = jax.random.normal(kn, (B, N, T, 2), jnp.float32)
    ego_hist = jax.random.normal(ke, (B, T, 2), jnp.float32)

    neighbors_encoded, ego_encoded = csp_encoder_forward(
        params, nbrs_hist, ego_hist, alpha, H)
    jax.block_until_ready((neighbors_encoded, ego_encoded))

    nb_ref, eg_ref = _ref_forward(params, nbrs_hist, ego_hist, alpha, H)
    np.testing.assert_allclose(np.asarray(neighbors_encoded), np.asarray(nb_ref),
                               rtol=1e-3, atol=1e-3)
    np.testing.assert_allclose(np.asarray(ego_encoded), np.asarray(eg_ref),
                               rtol=1e-3, atol=1e-3)

    assert neighbors_encoded.shape == (B, N, H)
    assert ego_encoded.shape == (B, H)
    print("KERNEL_OK")
</pallas_src>

<mosaic_0001>
module attributes {stable_mosaic.version = 11 : i64} {
  func.func @_lstm_encoder_kernel(%arg0: memref<8x16x2xf32, #tpu.memory_space<vmem>>, %arg1: memref<2x128xf32, #tpu.memory_space<vmem>>, %arg2: memref<32x128xf32, #tpu.memory_space<vmem>>, %arg3: memref<1x128xf32, #tpu.memory_space<vmem>>, %arg4: memref<16x32xf32, #tpu.memory_space<vmem>>) attributes {dimension_semantics = [], scalar_prefetch = 0 : i64, scratch_operands = 0 : i64, tpu.core_type = #tpu.core_type<tc>} {
    %c0 = arith.constant 0 : index
    %c0_0 = arith.constant 0 : index
    %0 = vector.load %arg1[%c0, %c0_0] : memref<2x128xf32, #tpu.memory_space<vmem>>, vector<2x128xf32>
    %c0_1 = arith.constant 0 : index
    %c0_2 = arith.constant 0 : index
    %1 = vector.load %arg2[%c0_1, %c0_2] : memref<32x128xf32, #tpu.memory_space<vmem>>, vector<32x128xf32>
    %c0_3 = arith.constant 0 : index
    %c0_4 = arith.constant 0 : index
    %2 = vector.load %arg3[%c0_3, %c0_4] : memref<1x128xf32, #tpu.memory_space<vmem>>, vector<1x128xf32>
    %c0_5 = arith.constant 0 : index
    %c0_6 = arith.constant 0 : index
    %c0_7 = arith.constant 0 : index
    %3 = vector.load %arg0[%c0_5, %c0_6, %c0_7] : memref<8x16x2xf32, #tpu.memory_space<vmem>>, vector<8x16x2xf32>
    %4 = vector.shape_cast %3 : vector<8x16x2xf32> to vector<128x2xf32>
    %cst = arith.constant dense<0.000000e+00> : vector<128x128xf32>
    %5 = tpu.matmul %4, %0, %cst {dimension_numbers = #tpu.dot_dimension_numbers<[1], [0], [0], [1], [0, 0, 1, 1], [], []>} : vector<128x2xf32>, vector<2x128xf32>, vector<128x128xf32> -> vector<128x128xf32>
    %6 = vector.broadcast %2 : vector<1x128xf32> to vector<128x128xf32>
    %7 = arith.addf %5, %6 : vector<128x128xf32>
    %8 = vector.shape_cast %7 : vector<128x128xf32> to vector<8x16x128xf32>
    %cst_8 = arith.constant 0.000000e+00 : f32
    %9 = vector.broadcast %cst_8 : f32 to vector<16x32xf32>
    %cst_9 = arith.constant 0.000000e+00 : f32
    %10 = vector.broadcast %cst_9 : f32 to vector<16x32xf32>
    %11 = vector.extract_strided_slice %8 {offsets = [0, 0, 0], sizes = [1, 16, 128], strides = [1, 1, 1]} : vector<8x16x128xf32> to vector<1x16x128xf32>
    %12 = vector.shape_cast %11 : vector<1x16x128xf32> to vector<16x128xf32>
    %cst_10 = arith.constant dense<0.000000e+00> : vector<16x128xf32>
    %13 = tpu.matmul %9, %1, %cst_10 {dimension_numbers = #tpu.dot_dimension_numbers<[1], [0], [0], [1], [0, 0, 1, 1], [], []>} : vector<16x32xf32>, vector<32x128xf32>, vector<16x128xf32> -> vector<16x128xf32>
    %14 = arith.addf %12, %13 : vector<16x128xf32>
    %15 = arith.negf %14 : vector<16x128xf32>
    %16 = math.exp %15 : vector<16x128xf32>
    %cst_11 = arith.constant 1.000000e+00 : f32
    %17 = vector.broadcast %cst_11 : f32 to vector<16x128xf32>
    %18 = arith.addf %17, %16 : vector<16x128xf32>
    %19 = arith.divf %17, %18 : vector<16x128xf32>
    %20 = math.tanh %14 : vector<16x128xf32>
    %21 = vector.extract_strided_slice %19 {offsets = [0, 0], sizes = [16, 32], strides = [1, 1]} : vector<16x128xf32> to vector<16x32xf32>
    %22 = vector.extract_strided_slice %19 {offsets = [0, 32], sizes = [16, 32], strides = [1, 1]} : vector<16x128xf32> to vector<16x32xf32>
    %23 = vector.extract_strided_slice %20 {offsets = [0, 64], sizes = [16, 32], strides = [1, 1]} : vector<16x128xf32> to vector<16x32xf32>
    %24 = vector.extract_strided_slice %19 {offsets = [0, 96], sizes = [16, 32], strides = [1, 1]} : vector<16x128xf32> to vector<16x32xf32>
    %25 = arith.mulf %22, %10 : vector<16x32xf32>
    %26 = arith.mulf %21, %23 : vector<16x32xf32>
    %27 = arith.addf %25, %26 : vector<16x32xf32>
    %28 = math.tanh %27 : vector<16x32xf32>
    %29 = arith.mulf %24, %28 : vector<16x32xf32>
    %30 = vector.extract_strided_slice %8 {offsets = [1, 0, 0], sizes = [1, 16, 128], strides = [1, 1, 1]} : vector<8x16x128xf32> to vector<1x16x128xf32>
    %31 = vector.shape_cast %30 : vector<1x16x128xf32> to vector<16x128xf32>
    %cst_12 = arith.constant dense<0.000000e+00> : vector<16x128xf32>
    %32 = tpu.matmul %29, %1, %cst_12 {dimension_numbers = #tpu.dot_dimension_numbers<[1], [0], [0], [1], [0, 0, 1, 1], [], []>} : vector<16x32xf32>, vector<32x128xf32>, vector<16x128xf32> -> vector<16x128xf32>
    %33 = arith.addf %31, %32 : vector<16x128xf32>
    %34 = arith.negf %33 : vector<16x128xf32>
    %35 = math.exp %34 : vector<16x128xf32>
    %cst_13 = arith.constant 1.000000e+00 : f32
    %36 = vector.broadcast %cst_13 : f32 to vector<16x128xf32>
    %37 = arith.addf %36, %35 : vector<16x128xf32>
    %38 = arith.divf %36, %37 : vector<16x128xf32>
    %39 = math.tanh %33 : vector<16x128xf32>
    %40 = vector.extract_strided_slice %38 {offsets = [0, 0], sizes = [16, 32], strides = [1, 1]} : vector<16x128xf32> to vector<16x32xf32>
    %41 = vector.extract_strided_slice %38 {offsets = [0, 32], sizes = [16, 32], strides = [1, 1]} : vector<16x128xf32> to vector<16x32xf32>
    %42 = vector.extract_strided_slice %39 {offsets = [0, 64], sizes = [16, 32], strides = [1, 1]} : vector<16x128xf32> to vector<16x32xf32>
    %43 = vector.extract_strided_slice %38 {offsets = [0, 96], sizes = [16, 32], strides = [1, 1]} : vector<16x128xf32> to vector<16x32xf32>
    %44 = arith.mulf %41, %27 : vector<16x32xf32>
    %45 = arith.mulf %40, %42 : vector<16x32xf32>
    %46 = arith.addf %44, %45 : vector<16x32xf32>
    %47 = math.tanh %46 : vector<16x32xf32>
    %48 = arith.mulf %43, %47 : vector<16x32xf32>
    %49 = vector.extract_strided_slice %8 {offsets = [2, 0, 0], sizes = [1, 16, 128], strides = [1, 1, 1]} : vector<8x16x128xf32> to vector<1x16x128xf32>
    %50 = vector.shape_cast %49 : vector<1x16x128xf32> to vector<16x128xf32>
    %cst_14 = arith.constant dense<0.000000e+00> : vector<16x128xf32>
    %51 = tpu.matmul %48, %1, %cst_14 {dimension_numbers = #tpu.dot_dimension_numbers<[1], [0], [0], [1], [0, 0, 1, 1], [], []>} : vector<16x32xf32>, vector<32x128xf32>, vector<16x128xf32> -> vector<16x128xf32>
    %52 = arith.addf %50, %51 : vector<16x128xf32>
    %53 = arith.negf %52 : vector<16x128xf32>
    %54 = math.exp %53 : vector<16x128xf32>
    %cst_15 = arith.constant 1.000000e+00 : f32
    %55 = vector.broadcast %cst_15 : f32 to vector<16x128xf32>
    %56 = arith.addf %55, %54 : vector<16x128xf32>
    %57 = arith.divf %55, %56 : vector<16x128xf32>
    %58 = math.tanh %52 : vector<16x128xf32>
    %59 = vector.extract_strided_slice %57 {offsets = [0, 0], sizes = [16, 32], strides = [1, 1]} : vector<16x128xf32> to vector<16x32xf32>
    %60 = vector.extract_strided_slice %57 {offsets = [0, 32], sizes = [16, 32], strides = [1, 1]} : vector<16x128xf32> to vector<16x32xf32>
    %61 = vector.extract_strided_slice %58 {offsets = [0, 64], sizes = [16, 32], strides = [1, 1]} : vector<16x128xf32> to vector<16x32xf32>
    %62 = vector.extract_strided_slice %57 {offsets = [0, 96], sizes = [16, 32], strides = [1, 1]} : vector<16x128xf32> to vector<16x32xf32>
    %63 = arith.mulf %60, %46 : vector<16x32xf32>
    %64 = arith.mulf %59, %61 : vector<16x32xf32>
    %65 = arith.addf %63, %64 : vector<16x32xf32>
    %66 = math.tanh %65 : vector<16x32xf32>
    %67 = arith.mulf %62, %66 : vector<16x32xf32>
    %68 = vector.extract_strided_slice %8 {offsets = [3, 0, 0], sizes = [1, 16, 128], strides = [1, 1, 1]} : vector<8x16x128xf32> to vector<1x16x128xf32>
    %69 = vector.shape_cast %68 : vector<1x16x128xf32> to vector<16x128xf32>
    %cst_16 = arith.constant dense<0.000000e+00> : vector<16x128xf32>
    %70 = tpu.matmul %67, %1, %cst_16 {dimension_numbers = #tpu.dot_dimension_numbers<[1], [0], [0], [1], [0, 0, 1, 1], [], []>} : vector<16x32xf32>, vector<32x128xf32>, vector<16x128xf32> -> vector<16x128xf32>
    %71 = arith.addf %69, %70 : vector<16x128xf32>
    %72 = arith.negf %71 : vector<16x128xf32>
    %73 = math.exp %72 : vector<16x128xf32>
    %cst_17 = arith.constant 1.000000e+00 : f32
    %74 = vector.broadcast %cst_17 : f32 to vector<16x128xf32>
    %75 = arith.addf %74, %73 : vector<16x128xf32>
    %76 = arith.divf %74, %75 : vector<16x128xf32>
    %77 = math.tanh %71 : vector<16x128xf32>
    %78 = vector.extract_strided_slice %76 {offsets = [0, 0], sizes = [16, 32], strides = [1, 1]} : vector<16x128xf32> to vector<16x32xf32>
    %79 = vector.extract_strided_slice %76 {offsets = [0, 32], sizes = [16, 32], strides = [1, 1]} : vector<16x128xf32> to vector<16x32xf32>
    %80 = vector.extract_strided_slice %77 {offsets = [0, 64], sizes = [16, 32], strides = [1, 1]} : vector<16x128xf32> to vector<16x32xf32>
    %81 = vector.extract_strided_slice %76 {offsets = [0, 96], sizes = [16, 32], strides = [1, 1]} : vector<16x128xf32> to vector<16x32xf32>
    %82 = arith.mulf %79, %65 : vector<16x32xf32>
    %83 = arith.mulf %78, %80 : vector<16x32xf32>
    %84 = arith.addf %82, %83 : vector<16x32xf32>
    %85 = math.tanh %84 : vector<16x32xf32>
    %86 = arith.mulf %81, %85 : vector<16x32xf32>
    %87 = vector.extract_strided_slice %8 {offsets = [4, 0, 0], sizes = [1, 16, 128], strides = [1, 1, 1]} : vector<8x16x128xf32> to vector<1x16x128xf32>
    %88 = vector.shape_cast %87 : vector<1x16x128xf32> to vector<16x128xf32>
    %cst_18 = arith.constant dense<0.000000e+00> : vector<16x128xf32>
    %89 = tpu.matmul %86, %1, %cst_18 {dimension_numbers = #tpu.dot_dimension_numbers<[1], [0], [0], [1], [0, 0, 1, 1], [], []>} : vector<16x32xf32>, vector<32x128xf32>, vector<16x128xf32> -> vector<16x128xf32>
    %90 = arith.addf %88, %89 : vector<16x128xf32>
    %91 = arith.negf %90 : vector<16x128xf32>
    %92 = math.exp %91 : vector<16x128xf32>
    %cst_19 = arith.constant 1.000000e+00 : f32
    %93 = vector.broadcast %cst_19 : f32 to vector<16x128xf32>
    %94 = arith.addf %93, %92 : vector<16x128xf32>
    %95 = arith.divf %93, %94 : vector<16x128xf32>
    %96 = math.tanh %90 : vector<16x128xf32>
    %97 = vector.extract_strided_slice %95 {offsets = [0, 0], sizes = [16, 32], strides = [1, 1]} : vector<16x128xf32> to vector<16x32xf32>
    %98 = vector.extract_strided_slice %95 {offsets = [0, 32], sizes = [16, 32], strides = [1, 1]} : vector<16x128xf32> to vector<16x32xf32>
    %99 = vector.extract_strided_slice %96 {offsets = [0, 64], sizes = [16, 32], strides = [1, 1]} : vector<16x128xf32> to vector<16x32xf32>
    %100 = vector.extract_strided_slice %95 {offsets = [0, 96], sizes = [16, 32], strides = [1, 1]} : vector<16x128xf32> to vector<16x32xf32>
    %101 = arith.mulf %98, %84 : vector<16x32xf32>
    %102 = arith.mulf %97, %99 : vector<16x32xf32>
    %103 = arith.addf %101, %102 : vector<16x32xf32>
    %104 = math.tanh %103 : vector<16x32xf32>
    %105 = arith.mulf %100, %104 : vector<16x32xf32>
    %106 = vector.extract_strided_slice %8 {offsets = [5, 0, 0], sizes = [1, 16, 128], strides = [1, 1, 1]} : vector<8x16x128xf32> to vector<1x16x128xf32>
    %107 = vector.shape_cast %106 : vector<1x16x128xf32> to vector<16x128xf32>
    %cst_20 = arith.constant dense<0.000000e+00> : vector<16x128xf32>
    %108 = tpu.matmul %105, %1, %cst_20 {dimension_numbers = #tpu.dot_dimension_numbers<[1], [0], [0], [1], [0, 0, 1, 1], [], []>} : vector<16x32xf32>, vector<32x128xf32>, vector<16x128xf32> -> vector<16x128xf32>
    %109 = arith.addf %107, %108 : vector<16x128xf32>
    %110 = arith.negf %109 : vector<16x128xf32>
    %111 = math.exp %110 : vector<16x128xf32>
    %cst_21 = arith.constant 1.000000e+00 : f32
    %112 = vector.broadcast %cst_21 : f32 to vector<16x128xf32>
    %113 = arith.addf %112, %111 : vector<16x128xf32>
    %114 = arith.divf %112, %113 : vector<16x128xf32>
    %115 = math.tanh %109 : vector<16x128xf32>
    %116 = vector.extract_strided_slice %114 {offsets = [0, 0], sizes = [16, 32], strides = [1, 1]} : vector<16x128xf32> to vector<16x32xf32>
    %117 = vector.extract_strided_slice %114 {offsets = [0, 32], sizes = [16, 32], strides = [1, 1]} : vector<16x128xf32> to vector<16x32xf32>
    %118 = vector.extract_strided_slice %115 {offsets = [0, 64], sizes = [16, 32], strides = [1, 1]} : vector<16x128xf32> to vector<16x32xf32>
    %119 = vector.extract_strided_slice %114 {offsets = [0, 96], sizes = [16, 32], strides = [1, 1]} : vector<16x128xf32> to vector<16x32xf32>
    %120 = arith.mulf %117, %103 : vector<16x32xf32>
    %121 = arith.mulf %116, %118 : vector<16x32xf32>
    %122 = arith.addf %120, %121 : vector<16x32xf32>
    %123 = math.tanh %122 : vector<16x32xf32>
    %124 = arith.mulf %119, %123 : vector<16x32xf32>
    %125 = vector.extract_strided_slice %8 {offsets = [6, 0, 0], sizes = [1, 16, 128], strides = [1, 1, 1]} : vector<8x16x128xf32> to vector<1x16x128xf32>
    %126 = vector.shape_cast %125 : vector<1x16x128xf32> to vector<16x128xf32>
    %cst_22 = arith.constant dense<0.000000e+00> : vector<16x128xf32>
    %127 = tpu.matmul %124, %1, %cst_22 {dimension_numbers = #tpu.dot_dimension_numbers<[1], [0], [0], [1], [0, 0, 1, 1], [], []>} : vector<16x32xf32>, vector<32x128xf32>, vector<16x128xf32> -> vector<16x128xf32>
    %128 = arith.addf %126, %127 : vector<16x128xf32>
    %129 = arith.negf %128 : vector<16x128xf32>
    %130 = math.exp %129 : vector<16x128xf32>
    %cst_23 = arith.constant 1.000000e+00 : f32
    %131 = vector.broadcast %cst_23 : f32 to vector<16x128xf32>
    %132 = arith.addf %131, %130 : vector<16x128xf32>
    %133 = arith.divf %131, %132 : vector<16x128xf32>
    %134 = math.tanh %128 : vector<16x128xf32>
    %135 = vector.extract_strided_slice %133 {offsets = [0, 0], sizes = [16, 32], strides = [1, 1]} : vector<16x128xf32> to vector<16x32xf32>
    %136 = vector.extract_strided_slice %133 {offsets = [0, 32], sizes = [16, 32], strides = [1, 1]} : vector<16x128xf32> to vector<16x32xf32>
    %137 = vector.extract_strided_slice %134 {offsets = [0, 64], sizes = [16, 32], strides = [1, 1]} : vector<16x128xf32> to vector<16x32xf32>
    %138 = vector.extract_strided_slice %133 {offsets = [0, 96], sizes = [16, 32], strides = [1, 1]} : vector<16x128xf32> to vector<16x32xf32>
    %139 = arith.mulf %136, %122 : vector<16x32xf32>
    %140 = arith.mulf %135, %137 : vector<16x32xf32>
    %141 = arith.addf %139, %140 : vector<16x32xf32>
    %142 = math.tanh %141 : vector<16x32xf32>
    %143 = arith.mulf %138, %142 : vector<16x32xf32>
    %144 = vector.extract_strided_slice %8 {offsets = [7, 0, 0], sizes = [1, 16, 128], strides = [1, 1, 1]} : vector<8x16x128xf32> to vector<1x16x128xf32>
    %145 = vector.shape_cast %144 : vector<1x16x128xf32> to vector<16x128xf32>
    %cst_24 = arith.constant dense<0.000000e+00> : vector<16x128xf32>
    %146 = tpu.matmul %143, %1, %cst_24 {dimension_numbers = #tpu.dot_dimension_numbers<[1], [0], [0], [1], [0, 0, 1, 1], [], []>} : vector<16x32xf32>, vector<32x128xf32>, vector<16x128xf32> -> vector<16x128xf32>
    %147 = arith.addf %145, %146 : vector<16x128xf32>
    %148 = arith.negf %147 : vector<16x128xf32>
    %149 = math.exp %148 : vector<16x128xf32>
    %cst_25 = arith.constant 1.000000e+00 : f32
    %150 = vector.broadcast %cst_25 : f32 to vector<16x128xf32>
    %151 = arith.addf %150, %149 : vector<16x128xf32>
    %152 = arith.divf %150, %151 : vector<16x128xf32>
    %153 = math.tanh %147 : vector<16x128xf32>
    %154 = vector.extract_strided_slice %152 {offsets = [0, 0], sizes = [16, 32], strides = [1, 1]} : vector<16x128xf32> to vector<16x32xf32>
    %155 = vector.extract_strided_slice %152 {offsets = [0, 32], sizes = [16, 32], strides = [1, 1]} : vector<16x128xf32> to vector<16x32xf32>
    %156 = vector.extract_strided_slice %153 {offsets = [0, 64], sizes = [16, 32], strides = [1, 1]} : vector<16x128xf32> to vector<16x32xf32>
    %157 = vector.extract_strided_slice %152 {offsets = [0, 96], sizes = [16, 32], strides = [1, 1]} : vector<16x128xf32> to vector<16x32xf32>
    %158 = arith.mulf %155, %141 : vector<16x32xf32>
    %159 = arith.mulf %154, %156 : vector<16x32xf32>
    %160 = arith.addf %158, %159 : vector<16x32xf32>
    %161 = math.tanh %160 : vector<16x32xf32>
    %162 = arith.mulf %157, %161 : vector<16x32xf32>
    %cst_26 = arith.constant 0.000000e+00 : f32
    %163 = vector.broadcast %cst_26 : f32 to vector<16x32xf32>
    %164 = arith.cmpf ogt, %162, %163 : vector<16x32xf32>
    %cst_27 = arith.constant 1.000000e-01 : f32
    %165 = vector.broadcast %cst_27 : f32 to vector<16x32xf32>
    %166 = arith.mulf %165, %162 : vector<16x32xf32>
    %167 = arith.select %164, %162, %166 : vector<16x32xi1>, vector<16x32xf32>
    %c0_28 = arith.constant 0 : index
    %c0_29 = arith.constant 0 : index
    %168 = vector.load %arg4[%c0_28, %c0_29] : memref<16x32xf32, #tpu.memory_space<vmem>>, vector<16x32xf32>
    tpu.vector_store %arg4[%c0_28, %c0_29], %167 {strides = array<i32>} : memref<16x32xf32, #tpu.memory_space<vmem>>, vector<16x32xf32>,
    return
  }
}

</mosaic_0001>

<bundles_post_ra>
// kernel: tpu_custom_call.1
= control target key start
LH: loop header
LB: loop body
LE: loop exit
PB: predicated region body
PF: predicated region fallthrough
CT: control target
= control target key end

     0   :  { %vm95_vm0 = vcmask 1041408   ;;  %vm46_vm1 = vcmask 15360   ;;  %s2065_s0 = inlined_call_operand.vmem [shape: f32[8,16,2], index: 0, kind: input, shape index: {}]   ;;  %s2066_s1 = inlined_call_operand.vmem [shape: f32[2,128], index: 1, kind: input, shape index: {}]   ;;  %s2067_s2 = inlined_call_operand.vmem [shape: f32[32,128], index: 2, kind: input, shape index: {}]   ;;  %s2068_s3 = inlined_call_operand.vmem [shape: f32[1,128], index: 3, kind: input, shape index: {}]   ;;  %s2069_s4 = inlined_call_operand.hbm [shape: f32[16,32], index: 4, kind: output, shape index: {}]  }
   0x1   :  { %v1767_v0 = vld [vmem:[%s2067_s2 + $0x18] sm:$0xff]  ;;  %v18_v1 = vld [vmem:[%s2066_s1] sm:$0x3]  ;;  %v1775_v2 = vld [vmem:[%s2067_s2 + $0x10] sm:$0xff] }
   0x2   :  { %1489 = vmatprep.subr.mxu1 %v1767_v0  ;;  %1463 = vmatprep.subr.msk.mxu0 %vm95_vm0, %v18_v1  ;;  %v24_v3 = vld [vmem:[%s2065_s0] sm:$0xff]  ;;  %v25_v4 = vld [vmem:[%s2065_s0 + $0x8] sm:$0xff] }
   0x3   :  { %1490 = vmatpush3.msra.mxu1 %v1767_v0  ;;  %1464 = vmatpush3.msk.msra.mxu0 %vm95_vm0, %v18_v1  ;;  %v1788_v5 = vld [vmem:[%s2067_s2 + $0x8] sm:$0xff] }
   0x4   :  { %9 = vsyncpa [#allocation3], 0  ;;  %1491 = vmatprep.subr.mxu1 %v1775_v2  ;;  %1465 = vmatprep.mubr.msk.f32.mxu0 %vm46_vm1, %v24_v3  ;;  %v1797_v6 = vld [vmem:[%s2067_s2] sm:$0xff]  ;;  %v1733_v7 = vmov 0.0   ;;  %s1734_s29 = smov 64   ;;  %v26_v37 = vld [vmem:[%s2065_s0 + $0x10] sm:$0xff] }
   0x5   :  { %1492 = vmatpush3.msra.mxu1 %v1775_v2  ;;  %1466 = vmatmul.mubr.msk.f32.vlgmr.msra.gmra.mxu0 %vm46_vm1, %v25_v4  ;;  %v1824_v9 = vld [vmem:[%s2068_s3] ss:$0 sm:$0xff]  ;;  %s1735_s3 = smov 32   ;;  %v27_v40 = vld [vmem:[%s2065_s0 + $0x18] sm:$0xff]  ;;  %vm244_vm2 = vcmask 261120  }
   0x6   :  { %1493 = vmatprep.subr.mxu1 %v1788_v5  ;;  %1497 = vmatprep.mubr.f32.mxu1 %v1733_v7 }
   0x7   :  { %1494 = vmatpush3.msra.mxu1 %v1788_v5  ;;  %1533 = vmatprep.subr.mxu0 %v1767_v0 }
   0x8   :  { %1495 = vmatprep.subr.mxu1 %v1797_v6  ;;  %1534 = vmatpush3.msra.mxu0 %v1767_v0 }
   0x9   :  { %1496 = vmatpush3.msra.mxu1 %v1797_v6  ;;  %1535 = vmatprep.subr.mxu0 %v1775_v2 }
   0xa   :  { %1498 = vmatmul.mubr.f32.vlgmr.msra.gmra.mxu1 %v1733_v7  ;;  %1500 = vmatprep.subr.mxu1 %v1767_v0 }
   0xb   :  { %1501 = vmatpush3.msra.mxu1 %v1767_v0  ;;  %1536 = vmatpush3.msra.mxu0 %v1775_v2 }
   0xc   :  { %1502 = vmatprep.subr.mxu1 %v1775_v2  ;;  %1537 = vmatprep.subr.mxu0 %v1788_v5 }
   0xd   :  { %1503 = vmatpush3.msra.mxu1 %v1775_v2  ;;  %1538 = vmatpush3.msra.mxu0 %v1788_v5 }
   0xe   :  { %1504 = vmatprep.subr.mxu1 %v1788_v5  ;;  %1539 = vmatprep.subr.mxu0 %v1797_v6 }
   0xf   :  { %1505 = vmatpush3.msra.mxu1 %v1788_v5  ;;  %1540 = vmatpush3.msra.mxu0 %v1797_v6 }
  0x10   :  { %1506 = vmatprep.subr.mxu1 %v1797_v6  ;;  %1555 = vmatprep.subr.mxu0 %v1767_v0 }
  0x11   :  { %1507 = vmatpush3.msra.mxu1 %v1797_v6  ;;  %1468 = vmatprep.mubr.msk.f32.mxu0 %vm46_vm1, %v26_v37 }
  0x12   :  { %1511 = vmatprep.subr.mxu1 %v1767_v0  ;;  %1469 = vmatmul.mubr.msk.f32.gmra.mxu0 %vm46_vm1, %v27_v40 }
  0xc5   :  { %v1467_v8 = vpop.f32.mrf.mxu0 }
  0xc6   :  { %v171_v13 = vadd.f32 %v1467_v8, %v1824_v9 }
  0xc7   :  { %v165_v10 = vpop.f32.mrf.mxu0 }
  0xc8   :  { %v166_v12 = vadd.f32 %v1824_v9, %v165_v10 }
  0xca   :  { %v1499_v11 = vpop.f32.mrf.mxu1 }
  0xcb   :  { %v324_v16 = vadd.f32 %v1499_v11, %v171_v13 }
  0xcc   :  { %v314_v14 = vpop.f32.mrf.mxu1 }
  0xcd   :  { %v323_v15 = vadd.f32 %v314_v14, %v166_v12  ;;  %v1369_v20 = vmul.f32 -1.442695, %v324_v16 }
  0xcf   :  { %1583 = vtanh.f32 %v323_v15  ;;  %v1368_v19 = vmul.f32 -1.442695, %v323_v15 }
  0xd0   :  { %1585 = vtanh.f32 %v324_v16  ;;  %v28_v16 = vld [vmem:[%s2065_s0 + $0x20] sm:$0xff] }
  0xd1   :  { %1587 = vpow2.f32 %v1368_v19  ;;  %1471 = vmatprep.mubr.msk.f32.mxu0 %vm46_vm1, %v28_v16 }
  0xd2   :  { %1589 = vpow2.f32 %v1369_v20  ;;  %v1470_v47 = vpop.f32.mrf.mxu0 }
  0xd3   :  { %v181_v48 = vadd.f32 %v1470_v47, %v1824_v9 }
  0xd4   :  { %v175_v49 = vpop.f32.mrf.mxu0 }
  0xd5   :  { %v176_v51 = vadd.f32 %v1824_v9, %v175_v49 }
  0xdc   :  { %v1584_v17 = vpop.eup %1583 }
  0xdd   :  { %343 = vrot.lane.b32.xlu0 %v1584_v17, %s1734_s29  ;;  %v1586_v18 = vpop.eup %1585  ;;  %v29_v17 = vld [vmem:[%s2065_s0 + $0x28] sm:$0xff] }
  0xde   :  { %v1588_v21 = vpop.eup %1587  ;;  %1472 = vmatmul.mubr.msk.f32.gmra.mxu0 %vm46_vm1, %v29_v17 }
  0xdf   :  { %v331_v22 = vadd.f32 1.0, %v1588_v21  ;;  %v1590_v23 = vpop.eup %1589 }
  0xe0   :  { %v332_v24 = vadd.f32 1.0, %v1590_v23 }
  0xe1   :  { %345 = vrot.lane.b32.xlu0 %v1586_v18, %s1734_s29  ;;  %1591 = vrcp.f32 %v331_v22 }
  0xe2   :  { %1593 = vrcp.f32 %v332_v24 }
  0xee   :  { %v1592_v25 = vpop.eup %1591 }
  0xef   :  { %v1594_v28 = vpop.eup %1593  ;;  %v339_v31 = vmul.f32 0.0, %v1592_v25 }
  0xf0   :  { %v340_v34 = vmul.f32 0.0, %v1594_v28 }
 0x14f   :  { %v344_v26 = vpop.permute.xlu0 %343 }
 0x150   :  { %v349_v27 = vmul.f32 %v1592_v25, %v344_v26 }
 0x152   :  { %353 = vrot.lane.b32.xlu1 %v349_v27, %s1735_s3 }
 0x153   :  { %v346_v29 = vpop.permute.xlu0 %345 }
 0x154   :  { %v350_v30 = vmul.f32 %v1594_v28, %v346_v29 }
 0x156   :  { %355 = vrot.lane.b32.xlu1 %v350_v30, %s1735_s3 }
 0x19e   :  { %v1473_v26 = vpop.f32.mrf.mxu0 }
 0x19f   :  { %v191_v27 = vadd.f32 %v1473_v26, %v1824_v9 }
 0x1c4   :  { %v354_v32 = vpop.permute.xlu1 %353 }
 0x1c5   :  { %v1832_v33 = vadd.f32 %v354_v32, %v339_v31 }
 0x1c7   :  { %1595 = vtanh.f32 %v1832_v33 }
 0x1c8   :  { %v356_v35 = vpop.permute.xlu1 %355 }
 0x1c9   :  { %v360_v36 = vadd.f32 %v356_v35, %v340_v34 }
 0x1cb   :  { %1597 = vtanh.f32 %v360_v36 }
 0x1d4   :  { %v1596_v38 = vpop.eup %1595 }
 0x1d5   :  { %365 = vrot.lane.b32.xlu0 %v1596_v38, %s1734_s29 }
 0x1d8   :  { %v1598_v39 = vpop.eup %1597 }
 0x1d9   :  { %367 = vrot.lane.b32.xlu1 %v1598_v39, %s1734_s29 }
 0x247   :  { %v366_v41 = vpop.permute.xlu0 %365 }
 0x248   :  { %v371_v42 = vmul.f32 %v1592_v25, %v366_v41 }
 0x24a   :  { %375 = vrot.lane.b32.xlu0 %v371_v42, %s1735_s3 }
 0x24b   :  { %v368_v43 = vpop.permute.xlu1 %367 }
 0x24c   :  { %v372_v44 = vmul.f32 %v1594_v28, %v368_v43  ;;  %v185_v28 = vpop.f32.mrf.mxu0 }
 0x24d   :  { %v186_v30 = vadd.f32 %v1824_v9, %v185_v28 }
 0x24e   :  { %377 = vrot.lane.b32.xlu1 %v372_v44, %s1735_s3 }
 0x2bc   :  { %v376_v45 = vpop.permute.xlu0 %375 }
 0x2bd   :  { %1508 = vmatprep.mubr.msk.f32.mxu1 %vm244_vm2, %v376_v45 }
 0x2c0   :  { %v378_v46 = vpop.permute.xlu1 %377 }
 0x2c1   :  { %1509 = vmatmul.mubr.msk.f32.vlgmr.msra.gmra.mxu1 %vm244_vm2, %v378_v46 }
 0x2c2   :  { %1512 = vmatpush3.msra.mxu1 %v1767_v0 }
 0x2c3   :  { %1513 = vmatprep.subr.mxu1 %v1775_v2 }
 0x2c4   :  { %1514 = vmatpush3.msra.mxu1 %v1775_v2 }
 0x2c5   :  { %1515 = vmatprep.subr.mxu1 %v1788_v5 }
 0x2c6   :  { %1516 = vmatpush3.msra.mxu1 %v1788_v5 }
 0x2c7   :  { %1517 = vmatprep.subr.mxu1 %v1797_v6 }
 0x2c8   :  { %1518 = vmatpush3.msra.mxu1 %v1797_v6 }
 0x2c9   :  { %1522 = vmatprep.subr.mxu1 %v1767_v0 }
 0x381   :  { %v1510_v50 = vpop.f32.mrf.mxu1 }
 0x382   :  { %v459_v52 = vadd.f32 %v1510_v50, %v181_v48 }
 0x383   :  { %v449_v53 = vpop.f32.mrf.mxu1 }
 0x384   :  { %1599 = vtanh.f32 %v459_v52  ;;  %v458_v54 = vadd.f32 %v449_v53, %v176_v51  ;;  %v1373_v57 = vmul.f32 -1.442695, %v459_v52 }
 0x386   :  { %1601 = vtanh.f32 %v458_v54  ;;  %v1372_v58 = vmul.f32 -1.442695, %v458_v54  ;;  %v30_v54 = vld [vmem:[%s2065_s0 + $0x30] sm:$0xff] }
 0x387   :  { %1603 = vpow2.f32 %v1373_v57  ;;  %1474 = vmatprep.mubr.msk.f32.mxu0 %vm46_vm1, %v30_v54 }
 0x388   :  { %1605 = vpow2.f32 %v1372_v58 }
 0x391   :  { %v1600_v55 = vpop.eup %1599 }
 0x392   :  { %480 = vrot.lane.b32.xlu1 %v1600_v55, %s1734_s29  ;;  %v31_v55 = vld [vmem:[%s2065_s0 + $0x38] sm:$0xff] }
 0x393   :  { %v1602_v56 = vpop.eup %1601  ;;  %1475 = vmatmul.mubr.msk.f32.gmra.mxu0 %vm46_vm1, %v31_v55 }
 0x394   :  { %478 = vrot.lane.b32.xlu0 %v1602_v56, %s1734_s29  ;;  %v1604_v59 = vpop.eup %1603 }
 0x395   :  { %v1606_v60 = vpop.eup %1605  ;;  %v467_v61 = vadd.f32 1.0, %v1604_v59 }
 0x396   :  { %v466_v62 = vadd.f32 1.0, %v1606_v60 }
 0x397   :  { %1607 = vrcp.f32 %v467_v61 }
 0x398   :  { %1609 = vrcp.f32 %v466_v62 }
 0x3a4   :  { %v1608_v63 = vpop.eup %1607 }
 0x3a5   :  { %v1610_v4 = vpop.eup %1609  ;;  %v475_v10 = vmul.f32 %v1608_v63, %v360_v36 }
 0x3a6   :  { %v474_v13 = vmul.f32 %v1610_v4, %v1832_v33 }
 0x404   :  { %v481_v1 = vpop.permute.xlu1 %480 }
 0x405   :  { %v485_v3 = vmul.f32 %v1608_v63, %v481_v1 }
 0x406   :  { %v479_v7 = vpop.permute.xlu0 %478 }
 0x407   :  { %490 = vrot.lane.b32.xlu1 %v485_v3, %s1735_s3  ;;  %v484_v8 = vmul.f32 %v1610_v4, %v479_v7 }
 0x409   :  { %488 = vrot.lane.b32.xlu0 %v484_v8, %s1735_s3 }
 0x453   :  { %v1476_v1 = vpop.f32.mrf.mxu0 }
 0x454   :  { %v201_v3 = vadd.f32 %v1476_v1, %v1824_v9 }
 0x479   :  { %v491_v11 = vpop.permute.xlu1 %490 }
 0x47a   :  { %v1863_v12 = vadd.f32 %v491_v11, %v475_v10 }
 0x47b   :  { %v489_v14 = vpop.permute.xlu0 %488 }
 0x47c   :  { %1611 = vtanh.f32 %v1863_v12  ;;  %v1867_v15 = vadd.f32 %v489_v14, %v474_v13 }
 0x47e   :  { %1613 = vtanh.f32 %v1867_v15 }
 0x489   :  { %v1612_v18 = vpop.eup %1611 }
 0x48a   :  { %502 = vrot.lane.b32.xlu1 %v1612_v18, %s1734_s29 }
 0x48b   :  { %v1614_v19 = vpop.eup %1613 }
 0x48c   :  { %500 = vrot.lane.b32.xlu0 %v1614_v19, %s1734_s29 }
 0x4fc   :  { %v503_v20 = vpop.permute.xlu1 %502 }
 0x4fd   :  { %v507_v21 = vmul.f32 %v1608_v63, %v503_v20 }
 0x4fe   :  { %v501_v22 = vpop.permute.xlu0 %500 }
 0x4ff   :  { %512 = vrot.lane.b32.xlu1 %v507_v21, %s1735_s3  ;;  %v506_v23 = vmul.f32 %v1610_v4, %v501_v22  ;;  %v195_v4 = vpop.f32.mrf.mxu0 }
 0x500   :  { %v196_v8 = vadd.f32 %v1824_v9, %v195_v4 }
 0x501   :  { %510 = vrot.lane.b32.xlu0 %v506_v23, %s1735_s3 }
 0x571   :  { %v513_v25 = vpop.permute.xlu1 %512 }
 0x573   :  { %v511_v24 = vpop.permute.xlu0 %510 }
 0x574   :  { %1519 = vmatprep.mubr.msk.f32.mxu1 %vm244_vm2, %v511_v24 }
 0x575   :  { %1520 = vmatmul.mubr.msk.f32.vlgmr.msra.gmra.mxu1 %vm244_vm2, %v513_v25 }
 0x576   :  { %1523 = vmatpush3.msra.mxu1 %v1767_v0 }
 0x577   :  { %1524 = vmatprep.subr.mxu1 %v1775_v2 }
 0x578   :  { %1525 = vmatpush3.msra.mxu1 %v1775_v2 }
 0x579   :  { %1526 = vmatprep.subr.mxu1 %v1788_v5 }
 0x57a   :  { %1527 = vmatpush3.msra.mxu1 %v1788_v5 }
 0x57b   :  { %1528 = vmatprep.subr.mxu1 %v1797_v6 }
 0x57c   :  { %1529 = vmatpush3.msra.mxu1 %v1797_v6 }
 0x57d   :  { %1544 = vmatprep.subr.mxu1 %v1767_v0 }
 0x635   :  { %v1521_v29 = vpop.f32.mrf.mxu1 }
 0x636   :  { %v594_v31 = vadd.f32 %v1521_v29, %v191_v27 }
 0x637   :  { %v584_v32 = vpop.f32.mrf.mxu1 }
 0x638   :  { %1615 = vtanh.f32 %v594_v31  ;;  %v593_v33 = vadd.f32 %v584_v32, %v186_v30  ;;  %v1377_v36 = vmul.f32 -1.442695, %v594_v31 }
 0x63a   :  { %1617 = vtanh.f32 %v593_v33  ;;  %v1376_v37 = vmul.f32 -1.442695, %v593_v33  ;;  %v32_v33 = vld [vmem:[%s2065_s0 + $0x40] sm:$0xff] }
 0x63b   :  { %1619 = vpow2.f32 %v1377_v36  ;;  %1477 = vmatprep.mubr.msk.f32.mxu0 %vm46_vm1, %v32_v33  ;;  %v35_v36 = vld [vmem:[%s2065_s0 + $0x58] sm:$0xff] }
 0x63c   :  { %1621 = vpow2.f32 %v1376_v37  ;;  %v36_v37 = vld [vmem:[%s2065_s0 + $0x60] sm:$0xff] }
 0x645   :  { %v1616_v34 = vpop.eup %1615 }
 0x646   :  { %615 = vrot.lane.b32.xlu1 %v1616_v34, %s1734_s29  ;;  %v33_v34 = vld [vmem:[%s2065_s0 + $0x48] sm:$0xff] }
 0x647   :  { %v1618_v35 = vpop.eup %1617  ;;  %1478 = vmatmul.mubr.msk.f32.gmra.mxu0 %vm46_vm1, %v33_v34 }
 0x648   :  { %613 = vrot.lane.b32.xlu0 %v1618_v35, %s1734_s29  ;;  %v1620_v38 = vpop.eup %1619  ;;  %v34_v35 = vld [vmem:[%s2065_s0 + $0x50] sm:$0xff] }
 0x649   :  { %v1622_v39 = vpop.eup %1621  ;;  %v602_v40 = vadd.f32 1.0, %v1620_v38  ;;  %1480 = vmatprep.mubr.msk.f32.mxu0 %vm46_vm1, %v34_v35 }
 0x64a   :  { %v601_v41 = vadd.f32 1.0, %v1622_v39  ;;  %v37_v39 = vld [vmem:[%s2065_s0 + $0x68] sm:$0xff] }
 0x64b   :  { %1623 = vrcp.f32 %v602_v40  ;;  %1481 = vmatmul.mubr.msk.f32.gmra.mxu0 %vm46_vm1, %v35_v36  ;;  %v38_v40 = vld [vmem:[%s2065_s0 + $0x70] sm:$0xff] }
 0x64c   :  { %1625 = vrcp.f32 %v601_v41  ;;  %1483 = vmatprep.mubr.msk.f32.mxu0 %vm46_vm1, %v36_v37 }
 0x64f   :  { %1484 = vmatmul.mubr.msk.f32.gmra.mxu0 %vm46_vm1, %v37_v39 }
 0x650   :  { %1486 = vmatprep.mubr.msk.f32.mxu0 %vm46_vm1, %v38_v40 }
 0x658   :  { %v1624_v42 = vpop.eup %1623 }
 0x659   :  { %v1626_v45 = vpop.eup %1625  ;;  %v610_v48 = vmul.f32 %v1624_v42, %v1863_v12 }
 0x65a   :  { %v609_v51 = vmul.f32 %v1626_v45, %v1867_v15 }
 0x6b8   :  { %v616_v43 = vpop.permute.xlu1 %615 }
 0x6b9   :  { %v620_v44 = vmul.f32 %v1624_v42, %v616_v43 }
 0x6ba   :  { %v614_v46 = vpop.permute.xlu0 %613 }
 0x6bb   :  { %625 = vrot.lane.b32.xlu1 %v620_v44, %s1735_s3  ;;  %v619_v47 = vmul.f32 %v1626_v45, %v614_v46 }
 0x6bd   :  { %623 = vrot.lane.b32.xlu0 %v619_v47, %s1735_s3 }
 0x72d   :  { %v626_v49 = vpop.permute.xlu1 %625 }
 0x72e   :  { %v1899_v50 = vadd.f32 %v626_v49, %v610_v48  ;;  %v1479_v49 = vpop.f32.mrf.mxu0 }
 0x72f   :  { %v624_v52 = vpop.permute.xlu0 %623 }
 0x730   :  { %1627 = vtanh.f32 %v1899_v50  ;;  %v1903_v53 = vadd.f32 %v624_v52, %v609_v51 }
 0x732   :  { %1629 = vtanh.f32 %v1903_v53 }
 0x73d   :  { %v1628_v56 = vpop.eup %1627 }
 0x73e   :  { %637 = vrot.lane.b32.xlu1 %v1628_v56, %s1734_s29 }
 0x73f   :  { %v1630_v57 = vpop.eup %1629 }
 0x740   :  { %635 = vrot.lane.b32.xlu0 %v1630_v57, %s1734_s29  ;;  %v211_v57 = vadd.f32 %v1479_v49, %v1824_v9 }
 0x7b0   :  { %v638_v58 = vpop.permute.xlu1 %637 }
 0x7b1   :  { %v642_v59 = vmul.f32 %v1624_v42, %v638_v58  ;;  %v39_v42 = vld [vmem:[%s2065_s0 + $0x78] sm:$0xff]  ;;  %s1736_s0 = smov [#allocation2]  }
 0x7b2   :  { %v636_v60 = vpop.permute.xlu0 %635  ;;  %1487 = vmatmul.mubr.msk.f32.gmra.mxu0 %vm46_vm1, %v39_v42  ;;  %s1339_s5 = sshll.u32 %s1736_s0, 4  ;;  %s1340_s5 = int_to_ptr.vmem [resolvable:$true] %s1339_s5 }
 0x7b3   :  { %647 = vrot.lane.b32.xlu1 %v642_v59, %s1735_s3  ;;  %v641_v61 = vmul.f32 %v1626_v45, %v636_v60  ;;  %p1716_p1 = scmp.lt.s32.totalorder %s1340_s5, %s1340_s5 }
 0x7b5   :  { %645 = vrot.lane.b32.xlu0 %v641_v61, %s1735_s3 }
 0x825   :  { %v648_v63 = vpop.permute.xlu1 %647 }
 0x827   :  { %v646_v62 = vpop.permute.xlu0 %645 }
 0x828   :  { %1530 = vmatprep.mubr.msk.f32.mxu1 %vm244_vm2, %v646_v62 }
 0x829   :  { %1531 = vmatmul.mubr.msk.f32.vlgmr.msra.gmra.mxu1 %vm244_vm2, %v648_v63 }
 0x82a   :  { %1545 = vmatpush3.msra.mxu1 %v1767_v0 }
 0x82b   :  { %1546 = vmatprep.subr.mxu1 %v1775_v2 }
 0x82c   :  { %1547 = vmatpush3.msra.mxu1 %v1775_v2 }
 0x82d   :  { %1548 = vmatprep.subr.mxu1 %v1788_v5 }
 0x82e   :  { %1549 = vmatpush3.msra.mxu1 %v1788_v5 }
 0x82f   :  { %1550 = vmatprep.subr.mxu1 %v1797_v6 }
 0x830   :  { %1551 = vmatpush3.msra.mxu1 %v1797_v6 }
 0x831   :  { %1566 = vmatprep.subr.mxu1 %v1767_v0 }
 0x8e9   :  { %v1532_v7 = vpop.f32.mrf.mxu1 }
 0x8ea   :  { %v729_v10 = vadd.f32 %v1532_v7, %v201_v3 }
 0x8eb   :  { %v719_v11 = vpop.f32.mrf.mxu1 }
 0x8ec   :  { %1631 = vtanh.f32 %v729_v10  ;;  %v728_v12 = vadd.f32 %v719_v11, %v196_v8  ;;  %v1381_v15 = vmul.f32 -1.442695, %v729_v10 }
 0x8ee   :  { %1633 = vtanh.f32 %v728_v12  ;;  %v1380_v16 = vmul.f32 -1.442695, %v728_v12 }
 0x8ef   :  { %1635 = vpow2.f32 %v1381_v15 }
 0x8f0   :  { %1637 = vpow2.f32 %v1380_v16 }
 0x8f9   :  { %v1632_v13 = vpop.eup %1631 }
 0x8fa   :  { %750 = vrot.lane.b32.xlu1 %v1632_v13, %s1734_s29 }
 0x8fb   :  { %v1634_v14 = vpop.eup %1633 }
 0x8fc   :  { %748 = vrot.lane.b32.xlu0 %v1634_v14, %s1734_s29  ;;  %v1636_v17 = vpop.eup %1635 }
 0x8fd   :  { %v1638_v18 = vpop.eup %1637  ;;  %v737_v19 = vadd.f32 1.0, %v1636_v17 }
 0x8fe   :  { %v736_v20 = vadd.f32 1.0, %v1638_v18 }
 0x8ff   :  { %1639 = vrcp.f32 %v737_v19 }
 0x900   :  { %1641 = vrcp.f32 %v736_v20 }
 0x90c   :  { %v1640_v21 = vpop.eup %1639 }
 0x90d   :  { %v1642_v24 = vpop.eup %1641  ;;  %v745_v27 = vmul.f32 %v1640_v21, %v1899_v50  ;;  %v205_v50 = vpop.f32.mrf.mxu0 }
 0x90e   :  { %v744_v30 = vmul.f32 %v1642_v24, %v1903_v53  ;;  %v206_v59 = vadd.f32 %v1824_v9, %v205_v50 }
 0x90f   :  { %v1987_v51 = vpop.f32.mrf.mxu0 }
 0x911   :  { %v1989_v52 = vpop.f32.mrf.mxu0 }
 0x912   :  { %v216_v34 = vadd.f32 %v1824_v9, %v1989_v52 }
 0x913   :  { %v1991_v53 = vpop.f32.mrf.mxu0 }
 0x915   :  { %v1993_v54 = vpop.f32.mrf.mxu0 }
 0x917   :  { %v1995_v55 = vpop.f32.mrf.mxu0 }
 0x919   :  { %v1997_v56 = vpop.f32.mrf.mxu0 }
 0x96c   :  { %v751_v22 = vpop.permute.xlu1 %750 }
 0x96d   :  { %v755_v23 = vmul.f32 %v1640_v21, %v751_v22 }
 0x96e   :  { %v749_v25 = vpop.permute.xlu0 %748 }
 0x96f   :  { %760 = vrot.lane.b32.xlu1 %v755_v23, %s1735_s3  ;;  %v754_v26 = vmul.f32 %v1642_v24, %v749_v25 }
 0x971   :  { %758 = vrot.lane.b32.xlu0 %v754_v26, %s1735_s3 }
 0x9e1   :  { %v761_v28 = vpop.permute.xlu1 %760 }
 0x9e2   :  { %v1935_v29 = vadd.f32 %v761_v28, %v745_v27 }
 0x9e3   :  { %v759_v31 = vpop.permute.xlu0 %758 }
 0x9e4   :  { %1643 = vtanh.f32 %v1935_v29  ;;  %v1939_v32 = vadd.f32 %v759_v31, %v744_v30 }
 0x9e6   :  { %1645 = vtanh.f32 %v1939_v32 }
 0x9f1   :  { %v1644_v38 = vpop.eup %1643 }
 0x9f2   :  { %772 = vrot.lane.b32.xlu1 %v1644_v38, %s1734_s29 }
 0x9f3   :  { %v1646_v41 = vpop.eup %1645 }
 0x9f4   :  { %770 = vrot.lane.b32.xlu0 %v1646_v41, %s1734_s29 }
 0xa64   :  { %v773_v43 = vpop.permute.xlu1 %772 }
 0xa65   :  { %v777_v44 = vmul.f32 %v1640_v21, %v773_v43 }
 0xa66   :  { %v771_v45 = vpop.permute.xlu0 %770 }
 0xa67   :  { %782 = vrot.lane.b32.xlu1 %v777_v44, %s1735_s3  ;;  %v776_v46 = vmul.f32 %v1642_v24, %v771_v45 }
 0xa69   :  { %780 = vrot.lane.b32.xlu0 %v776_v46, %s1735_s3 }
 0xad9   :  { %v783_v48 = vpop.permute.xlu1 %782 }
 0xadb   :  { %v781_v47 = vpop.permute.xlu0 %780 }
 0xadc   :  { %1541 = vmatprep.mubr.msk.f32.mxu0 %vm244_vm2, %v781_v47 }
 0xadd   :  { %1542 = vmatmul.mubr.msk.f32.vlgmr.msra.gmra.mxu0 %vm244_vm2, %v783_v48 }
 0xade   :  { %1556 = vmatpush3.msra.mxu0 %v1767_v0 }
 0xadf   :  { %1557 = vmatprep.subr.mxu0 %v1775_v2 }
 0xae0   :  { %1558 = vmatpush3.msra.mxu0 %v1775_v2 }
 0xae1   :  { %1559 = vmatprep.subr.mxu0 %v1788_v5 }
 0xae2   :  { %1560 = vmatpush3.msra.mxu0 %v1788_v5 }
 0xae3   :  { %1561 = vmatprep.subr.mxu0 %v1797_v6 }
 0xae4   :  { %1562 = vmatpush3.msra.mxu0 %v1797_v6 }
 0xb9d   :  { %v1543_v58 = vpop.f32.mrf.mxu0 }
 0xb9e   :  { %v864_v60 = vadd.f32 %v1543_v58, %v211_v57 }
 0xb9f   :  { %v854_v61 = vpop.f32.mrf.mxu0 }
 0xba0   :  { %1647 = vtanh.f32 %v864_v60  ;;  %v863_v62 = vadd.f32 %v854_v61, %v206_v59  ;;  %v1385_v3 = vmul.f32 -1.442695, %v864_v60 }
 0xba2   :  { %1649 = vtanh.f32 %v863_v62  ;;  %v1384_v4 = vmul.f32 -1.442695, %v863_v62 }
 0xba3   :  { %1651 = vpow2.f32 %v1385_v3 }
 0xba4   :  { %1653 = vpow2.f32 %v1384_v4  ;;  %v231_v4 = vadd.f32 %v1991_v53, %v1824_v9 }
 0xbad   :  { %v1648_v63 = vpop.eup %1647 }
 0xbae   :  { %885 = vrot.lane.b32.xlu1 %v1648_v63, %s1734_s29 }
 0xbaf   :  { %v1650_v1 = vpop.eup %1649 }
 0xbb0   :  { %883 = vrot.lane.b32.xlu0 %v1650_v1, %s1734_s29  ;;  %v1652_v7 = vpop.eup %1651 }
 0xbb1   :  { %v1654_v8 = vpop.eup %1653  ;;  %v872_v10 = vadd.f32 1.0, %v1652_v7 }
 0xbb2   :  { %v871_v11 = vadd.f32 1.0, %v1654_v8  ;;  %v226_v8 = vadd.f32 %v1824_v9, %v1993_v54 }
 0xbb3   :  { %1655 = vrcp.f32 %v872_v10 }
 0xbb4   :  { %1657 = vrcp.f32 %v871_v11 }
 0xbc0   :  { %v1656_v12 = vpop.eup %1655 }
 0xbc1   :  { %v1658_v15 = vpop.eup %1657  ;;  %v880_v18 = vmul.f32 %v1656_v12, %v1935_v29 }
 0xbc2   :  { %v879_v21 = vmul.f32 %v1658_v15, %v1939_v32  ;;  %v221_v32 = vadd.f32 %v1987_v51, %v1824_v9 }
 0xc20   :  { %v886_v13 = vpop.permute.xlu1 %885 }
 0xc21   :  { %v890_v14 = vmul.f32 %v1656_v12, %v886_v13 }
 0xc22   :  { %v884_v16 = vpop.permute.xlu0 %883 }
 0xc23   :  { %895 = vrot.lane.b32.xlu1 %v890_v14, %s1735_s3  ;;  %v889_v17 = vmul.f32 %v1658_v15, %v884_v16 }
 0xc25   :  { %893 = vrot.lane.b32.xlu0 %v889_v17, %s1735_s3 }
 0xc95   :  { %v896_v19 = vpop.permute.xlu1 %895 }
 0xc96   :  { %v900_v20 = vadd.f32 %v896_v19, %v880_v18 }
 0xc97   :  { %v894_v22 = vpop.permute.xlu0 %893 }
 0xc98   :  { %1659 = vtanh.f32 %v900_v20  ;;  %v899_v23 = vadd.f32 %v894_v22, %v879_v21 }
 0xc9a   :  { %1661 = vtanh.f32 %v899_v23 }
 0xca5   :  { %v1660_v24 = vpop.eup %1659 }
 0xca6   :  { %907 = vrot.lane.b32.xlu1 %v1660_v24, %s1734_s29 }
 0xca7   :  { %v1662_v25 = vpop.eup %1661 }
 0xca8   :  { %905 = vrot.lane.b32.xlu0 %v1662_v25, %s1734_s29 }
 0xd18   :  { %v908_v26 = vpop.permute.xlu1 %907 }
 0xd19   :  { %v912_v27 = vmul.f32 %v1656_v12, %v908_v26 }
 0xd1a   :  { %v906_v28 = vpop.permute.xlu0 %905 }
 0xd1b   :  { %917 = vrot.lane.b32.xlu1 %v912_v27, %s1735_s3  ;;  %v911_v29 = vmul.f32 %v1658_v15, %v906_v28 }
 0xd1d   :  { %915 = vrot.lane.b32.xlu0 %v911_v29, %s1735_s3 }
 0xd8d   :  { %v918_v31 = vpop.permute.xlu1 %917 }
 0xd8f   :  { %v916_v30 = vpop.permute.xlu0 %915 }
 0xd90   :  { %1552 = vmatprep.mubr.msk.f32.mxu1 %vm244_vm2, %v916_v30 }
 0xd91   :  { %1553 = vmatmul.mubr.msk.f32.vlgmr.msra.gmra.mxu1 %vm244_vm2, %v918_v31 }
 0xd92   :  { %1567 = vmatpush3.msra.mxu1 %v1767_v0 }
 0xd93   :  { %1568 = vmatprep.subr.mxu1 %v1775_v2 }
 0xd94   :  { %1569 = vmatpush3.msra.mxu1 %v1775_v2 }
 0xd95   :  { %1570 = vmatprep.subr.mxu1 %v1788_v5 }
 0xd96   :  { %1571 = vmatpush3.msra.mxu1 %v1788_v5 }
 0xd97   :  { %1572 = vmatprep.subr.mxu1 %v1797_v6 }
 0xd98   :  { %1573 = vmatpush3.msra.mxu1 %v1797_v6 }
 0xe51   :  { %v1554_v33 = vpop.f32.mrf.mxu1 }
 0xe52   :  { %v999_v0 = vadd.f32 %v1554_v33, %v221_v32 }
 0xe53   :  { %v989_v35 = vpop.f32.mrf.mxu1 }
 0xe54   :  { %1663 = vtanh.f32 %v999_v0  ;;  %v998_v36 = vadd.f32 %v989_v35, %v216_v34  ;;  %v1389_v37 = vmul.f32 -1.442695, %v999_v0 }
 0xe56   :  { %1665 = vtanh.f32 %v998_v36  ;;  %v1388_v6 = vmul.f32 -1.442695, %v998_v36 }
 0xe57   :  { %1667 = vpow2.f32 %v1389_v37 }
 0xe58   :  { %1669 = vpow2.f32 %v1388_v6  ;;  %v236_v6 = vadd.f32 %v1824_v9, %v1997_v56 }
 0xe61   :  { %v1664_v2 = vpop.eup %1663 }
 0xe62   :  { %1020 = vrot.lane.b32.xlu1 %v1664_v2, %s1734_s29 }
 0xe63   :  { %v1666_v5 = vpop.eup %1665 }
 0xe64   :  { %1018 = vrot.lane.b32.xlu0 %v1666_v5, %s1734_s29  ;;  %v1668_v38 = vpop.eup %1667  ;;  %v241_v5 = vadd.f32 %v1995_v55, %v1824_v9 }
 0xe65   :  { %v1670_v39 = vpop.eup %1669  ;;  %v1007_v40 = vadd.f32 1.0, %v1668_v38 }
 0xe66   :  { %v1006_v41 = vadd.f32 1.0, %v1670_v39 }
 0xe67   :  { %1671 = vrcp.f32 %v1007_v40 }
 0xe68   :  { %1673 = vrcp.f32 %v1006_v41 }
 0xe74   :  { %v1672_v42 = vpop.eup %1671 }
 0xe75   :  { %v1674_v45 = vpop.eup %1673  ;;  %v1015_v48 = vmul.f32 %v1672_v42, %v900_v20 }
 0xe76   :  { %v1014_v51 = vmul.f32 %v1674_v45, %v899_v23 }
 0xed4   :  { %v1021_v43 = vpop.permute.xlu1 %1020 }
 0xed5   :  { %v1025_v44 = vmul.f32 %v1672_v42, %v1021_v43 }
 0xed6   :  { %v1019_v46 = vpop.permute.xlu0 %1018 }
 0xed7   :  { %1030 = vrot.lane.b32.xlu1 %v1025_v44, %s1735_s3  ;;  %v1024_v47 = vmul.f32 %v1674_v45, %v1019_v46 }
 0xed9   :  { %1028 = vrot.lane.b32.xlu0 %v1024_v47, %s1735_s3 }
 0xf49   :  { %v1031_v49 = vpop.permute.xlu1 %1030 }
 0xf4a   :  { %v1035_v50 = vadd.f32 %v1031_v49, %v1015_v48 }
 0xf4b   :  { %v1029_v52 = vpop.permute.xlu0 %1028 }
 0xf4c   :  { %1675 = vtanh.f32 %v1035_v50  ;;  %v1034_v57 = vadd.f32 %v1029_v52, %v1014_v51 }
 0xf4e   :  { %1677 = vtanh.f32 %v1034_v57 }
 0xf59   :  { %v1676_v58 = vpop.eup %1675 }
 0xf5a   :  { %1042 = vrot.lane.b32.xlu1 %v1676_v58, %s1734_s29 }
 0xf5b   :  { %v1678_v59 = vpop.eup %1677 }
 0xf5c   :  { %1040 = vrot.lane.b32.xlu0 %v1678_v59, %s1734_s29 }
 0xfcc   :  { %v1043_v60 = vpop.permute.xlu1 %1042 }
 0xfcd   :  { %v1047_v61 = vmul.f32 %v1672_v42, %v1043_v60 }
 0xfce   :  { %v1041_v62 = vpop.permute.xlu0 %1040 }
 0xfcf   :  { %1052 = vrot.lane.b32.xlu1 %v1047_v61, %s1735_s3  ;;  %v1046_v63 = vmul.f32 %v1674_v45, %v1041_v62 }
 0xfd1   :  { %1050 = vrot.lane.b32.xlu0 %v1046_v63, %s1735_s3 }
0x1041   :  { %v1053_v3 = vpop.permute.xlu1 %1052 }
0x1043   :  { %v1051_v1 = vpop.permute.xlu0 %1050 }
0x1044   :  { %1563 = vmatprep.mubr.msk.f32.mxu0 %vm244_vm2, %v1051_v1 }
0x1045   :  { %1564 = vmatmul.mubr.msk.f32.vlgmr.msra.gmra.mxu0 %vm244_vm2, %v1053_v3 }
0x1105   :  { %v1565_v7 = vpop.f32.mrf.mxu0 }
0x1106   :  { %v1134_v10 = vadd.f32 %v1565_v7, %v231_v4 }
0x1107   :  { %v1124_v11 = vpop.f32.mrf.mxu0 }
0x1108   :  { %1679 = vtanh.f32 %v1134_v10  ;;  %v1133_v12 = vadd.f32 %v1124_v11, %v226_v8  ;;  %v1393_v15 = vmul.f32 -1.442695, %v1134_v10 }
0x110a   :  { %1681 = vtanh.f32 %v1133_v12  ;;  %v1392_v16 = vmul.f32 -1.442695, %v1133_v12 }
0x110b   :  { %1683 = vpow2.f32 %v1393_v15 }
0x110c   :  { %1685 = vpow2.f32 %v1392_v16 }
0x1115   :  { %v1680_v13 = vpop.eup %1679 }
0x1116   :  { %1155 = vrot.lane.b32.xlu1 %v1680_v13, %s1734_s29 }
0x1117   :  { %v1682_v14 = vpop.eup %1681 }
0x1118   :  { %1153 = vrot.lane.b32.xlu0 %v1682_v14, %s1734_s29  ;;  %v1684_v53 = vpop.eup %1683 }
0x1119   :  { %v1686_v17 = vpop.eup %1685  ;;  %v1142_v18 = vadd.f32 1.0, %v1684_v53 }
0x111a   :  { %v1141_v19 = vadd.f32 1.0, %v1686_v17 }
0x111b   :  { %1687 = vrcp.f32 %v1142_v18 }
0x111c   :  { %1689 = vrcp.f32 %v1141_v19 }
0x1128   :  { %v1688_v54 = vpop.eup %1687 }
0x1129   :  { %v1690_v22 = vpop.eup %1689  ;;  %v1150_v25 = vmul.f32 %v1688_v54, %v1035_v50 }
0x112a   :  { %v1149_v28 = vmul.f32 %v1690_v22, %v1034_v57 }
0x1188   :  { %v1156_v20 = vpop.permute.xlu1 %1155 }
0x1189   :  { %v1160_v21 = vmul.f32 %v1688_v54, %v1156_v20 }
0x118a   :  { %v1154_v23 = vpop.permute.xlu0 %1153 }
0x118b   :  { %1165 = vrot.lane.b32.xlu1 %v1160_v21, %s1735_s3  ;;  %v1159_v24 = vmul.f32 %v1690_v22, %v1154_v23 }
0x118d   :  { %1163 = vrot.lane.b32.xlu0 %v1159_v24, %s1735_s3 }
0x11fd   :  { %v1166_v26 = vpop.permute.xlu1 %1165 }
0x11fe   :  { %v1170_v27 = vadd.f32 %v1166_v26, %v1150_v25 }
0x11ff   :  { %v1164_v29 = vpop.permute.xlu0 %1163 }
0x1200   :  { %1691 = vtanh.f32 %v1170_v27  ;;  %v1169_v30 = vadd.f32 %v1164_v29, %v1149_v28 }
0x1202   :  { %1693 = vtanh.f32 %v1169_v30 }
0x120d   :  { %v1692_v31 = vpop.eup %1691 }
0x120e   :  { %1177 = vrot.lane.b32.xlu1 %v1692_v31, %s1734_s29 }
0x120f   :  { %v1694_v32 = vpop.eup %1693 }
0x1210   :  { %1175 = vrot.lane.b32.xlu0 %v1694_v32, %s1734_s29 }
0x1280   :  { %v1178_v33 = vpop.permute.xlu1 %1177 }
0x1281   :  { %v1182_v34 = vmul.f32 %v1688_v54, %v1178_v33 }
0x1282   :  { %v1176_v0 = vpop.permute.xlu0 %1175 }
0x1283   :  { %1187 = vrot.lane.b32.xlu1 %v1182_v34, %s1735_s3  ;;  %v1181_v35 = vmul.f32 %v1690_v22, %v1176_v0 }
0x1285   :  { %1185 = vrot.lane.b32.xlu0 %v1181_v35, %s1735_s3 }
0x12f5   :  { %v1188_v2 = vpop.permute.xlu1 %1187 }
0x12f7   :  { %v1186_v36 = vpop.permute.xlu0 %1185 }
0x12f8   :  { %1574 = vmatprep.mubr.msk.f32.mxu1 %vm244_vm2, %v1186_v36 }
0x12f9   :  { %1575 = vmatmul.mubr.msk.f32.vlgmr.msra.gmra.mxu1 %vm244_vm2, %v1188_v2 }
0x13b9   :  { %v1576_v37 = vpop.f32.mrf.mxu1 }
0x13ba   :  { %v1269_v38 = vadd.f32 %v1576_v37, %v241_v5 }
0x13bb   :  { %v1259_v39 = vpop.f32.mrf.mxu1 }
0x13bc   :  { %1695 = vtanh.f32 %v1269_v38  ;;  %v1268_v40 = vadd.f32 %v1259_v39, %v236_v6  ;;  %v1397_v43 = vmul.f32 -1.442695, %v1269_v38 }
0x13be   :  { %1697 = vtanh.f32 %v1268_v40  ;;  %v1396_v44 = vmul.f32 -1.442695, %v1268_v40 }
0x13bf   :  { %1699 = vpow2.f32 %v1397_v43 }
0x13c0   :  { %1701 = vpow2.f32 %v1396_v44 }
0x13c9   :  { %v1696_v41 = vpop.eup %1695 }
0x13ca   :  { %1290 = vrot.lane.b32.xlu1 %v1696_v41, %s1734_s29 }
0x13cb   :  { %v1698_v42 = vpop.eup %1697 }
0x13cc   :  { %1288 = vrot.lane.b32.xlu0 %v1698_v42, %s1734_s29  ;;  %v1700_v55 = vpop.eup %1699 }
0x13cd   :  { %v1702_v45 = vpop.eup %1701  ;;  %v1277_v46 = vadd.f32 1.0, %v1700_v55 }
0x13ce   :  { %v1276_v47 = vadd.f32 1.0, %v1702_v45 }
0x13cf   :  { %1703 = vrcp.f32 %v1277_v46 }
0x13d0   :  { %1705 = vrcp.f32 %v1276_v47 }
0x13dc   :  { %v1704_v9 = vpop.eup %1703 }
0x13dd   :  { %v1706_v49 = vpop.eup %1705  ;;  %v1285_v52 = vmul.f32 %v1704_v9, %v1170_v27 }
0x13de   :  { %v1284_v59 = vmul.f32 %v1706_v49, %v1169_v30 }
0x143c   :  { %v1291_v56 = vpop.permute.xlu1 %1290 }
0x143d   :  { %v1295_v48 = vmul.f32 %v1704_v9, %v1291_v56 }
0x143e   :  { %v1289_v50 = vpop.permute.xlu0 %1288 }
0x143f   :  { %1300 = vrot.lane.b32.xlu1 %v1295_v48, %s1735_s3  ;;  %v1294_v51 = vmul.f32 %v1706_v49, %v1289_v50 }
0x1441   :  { %1298 = vrot.lane.b32.xlu0 %v1294_v51, %s1735_s3 }
0x14b1   :  { %v1301_v57 = vpop.permute.xlu1 %1300 }
0x14b2   :  { %v1305_v58 = vadd.f32 %v1301_v57, %v1285_v52 }
0x14b3   :  { %v1299_v60 = vpop.permute.xlu0 %1298 }
0x14b4   :  { %1707 = vtanh.f32 %v1305_v58  ;;  %v1304_v61 = vadd.f32 %v1299_v60, %v1284_v59 }
0x14b6   :  { %1709 = vtanh.f32 %v1304_v61 }
0x14c1   :  { %v1708_v62 = vpop.eup %1707 }
0x14c2   :  { %1312 = vrot.lane.b32.xlu1 %v1708_v62, %s1734_s29 }
0x14c3   :  { %v1710_v63 = vpop.eup %1709 }
0x14c4   :  { %1310 = vrot.lane.b32.xlu0 %v1710_v63, %s1734_s29  ;;  %s1711_s29 = scalar_lea.vmem %s1340_s5, 256 }
0x14c5   :  { %p1712_p0 = scmp.ne.s32.totalorder %s1340_s5, %s1711_s29  ;;  %p1717_p2 = scmp.lt.s32.totalorder %s1711_s29, %s1711_s29 }
0x14c7   :  { %p1718_p3 = por %p1717_p2, %p1716_p1 }
0x14c9   :  { %p1719_p4 = pnand %p1718_p3, %p1712_p0 }
0x1534   :  { %v1313_v1 = vpop.permute.xlu1 %1312 }
0x1535   :  { %v1317_v3 = vmul.f32 %v1704_v9, %v1313_v1 }
0x1536   :  { %v1311_v7 = vpop.permute.xlu0 %1310 }
0x1537   :  { %v1321_v4 = vmul.f32 0.1, %v1317_v3  ;;  %vm1319_vm3 = vcmp.gt.f32.partialorder %v1317_v3, 0.0  ;;  %v1316_v8 = vmul.f32 %v1706_v49, %v1311_v7 }
0x1539   :  { %v1323_v10 = vsel %vm1319_vm3, %v1317_v3, %v1321_v4  ;;  %v1320_v11 = vmul.f32 0.1, %v1316_v8  ;;  %vm1318_vm4 = vcmp.gt.f32.partialorder %v1316_v8, 0.0 }
0x153a   :  { %1328 = vrot.lane.b32.xlu1 %v1323_v10, %s1735_s3 }
0x153b   :  { %v1322_v12 = vsel %vm1318_vm4, %v1316_v8, %v1320_v11 }
0x153c   :  { %1326 = vrot.lane.b32.xlu0 %v1322_v12, %s1735_s3 }
0x15ac   :  { %v1329_v13 = vpop.permute.xlu1 %1328 }
0x15ad   :  { %1333 = vst.msk [vmem:[#allocation2 + $0x8] sm:$0xff] %vm244_vm2, %v1329_v13 }
0x15ae   :  { %v1327_v14 = vpop.permute.xlu0 %1326 }
0x15af   :  { %1332 = vst.msk [vmem:[#allocation2] sm:$0xff] %vm244_vm2, %v1327_v14 }
0x15b0   :  { %1722 = shalt.err (!%p1719_p4)
}
0x15b1   :  { %s1737_s6 = smov 128   ;;  %s1738_s7 = smov 8  }
0x15b2   :  { %1345 = dma.vmem_to_hbm [thread:$0]  %s1340_s5, 256, %s2069_s4, [#allocation3], %s1737_s6, %s1737_s6, %s1738_s7  }
0x15b3   :  { %1731 = dma.done.wait [#allocation3], 256  }
0x15b4   :  { %1732 = vsyncadd [#allocation3], 4294967040 }
0x15b5   :  { %1349 = vsyncpa [#allocation3], 1 }

</bundles_post_ra>
